<compile_context>
chip_gen: v7x
topology: tpu7x:2x2x1
jax: 0.10.0
libtpu: 0.0.40
codegen_flags: <defaults>
</compile_context>

<pallas_src>
import math
import functools

import jax
import jax.numpy as jnp
from jax import lax
from jax.experimental import pallas as pl
from jax.experimental.pallas import tpu as pltpu


def _attention_kernel(q_ref, k_ref, v_ref, o_ref, *, scale):
    # q_ref/k_ref/v_ref/o_ref: full (B, H, S, D) VMEM tiles (single grid step).
    B, H, S, D = q_ref.shape

    # Fold (B, H) into one batch dim; last-two-dims (S, D) tile is untouched.
    q = q_ref[...].reshape(B * H, S, D)
    k = k_ref[...].reshape(B * H, S, D)
    v = v_ref[...].reshape(B * H, S, D)

    # scores = (q @ k^T) * scale, batched over B*H, contracting D on both sides
    # (no explicit transpose -> no XLU vxpose before the MXU).
    s = jnp.einsum(
        "bqd,bkd->bqk", q, k, preferred_element_type=jnp.float32
    ) * scale                                              # (B*H, S, S)

    # Numerically-stable softmax over the last axis (exact divide).
    m = jnp.max(s, axis=-1, keepdims=True)
    p = jnp.exp(s - m)
    denom = jnp.sum(p, axis=-1, keepdims=True)
    attn = p / denom                                       # (B*H, S, S)

    # out = attn @ v, f32 accumulation on the MXU.
    out = jnp.einsum(
        "bqk,bkd->bqd", attn.astype(v.dtype), v,
        preferred_element_type=jnp.float32,
    )                                                      # (B*H, S, D)

    o_ref[...] = out.reshape(B, H, S, D).astype(o_ref.dtype)


def attention(q, k, v):
    """Scaled dot-product attention. q, k, v: (B, H, S, D)."""
    B, H, S, D = q.shape
    assert k.shape == (B, H, S, D) and v.shape == (B, H, S, D)
    scale = 1.0 / math.sqrt(D)

    # VMEM budget: 4 resident (B,H,S,D) f32 tensors (q, k, v, out) plus the
    # f32 (B*H, S, S) score / exp / attn intermediates kept live through the
    # softmax.  Sized against the most conservative scoped-VMEM default
    # (16 MiB on v5e; 32 MiB scoped on v6e/v7x, v7x physical is 64 MiB).
    io_bytes = 4 * B * H * S * D * 4
    interm_bytes = 3 * B * H * S * S * 4 + B * H * S * D * 4
    assert io_bytes + interm_bytes < 16 * 1024 * 1024, (
        "working set exceeds conservative scoped VMEM; add flash-style "
        "KV tiling (TODO(synk)) before scaling S"
    )

    flops = 4 * B * H * S * S * D + 4 * B * H * S * S      # QK^T + PV + softmax
    bytes_accessed = 4 * B * H * S * D * 4
    transcendentals = B * H * S * S

    return pl.pallas_call(
        functools.partial(_attention_kernel, scale=scale),
        out_shape=jax.ShapeDtypeStruct((B, H, S, D), q.dtype),
        # Single step, whole-array blocks (block shape == array shape, so the
        # (8, 128) divisibility rule is satisfied trivially).
        in_specs=[
            pl.BlockSpec((B, H, S, D), lambda: (0, 0, 0, 0)),
            pl.BlockSpec((B, H, S, D), lambda: (0, 0, 0, 0)),
            pl.BlockSpec((B, H, S, D), lambda: (0, 0, 0, 0)),
        ],
        out_specs=pl.BlockSpec((B, H, S, D), lambda: (0, 0, 0, 0)),
        cost_estimate=pl.CostEstimate(
            flops=flops,
            transcendentals=transcendentals,
            bytes_accessed=bytes_accessed,
        ),
    )(q, k, v)


def attention_ref(q, k, v):
    """Pure-JAX reference mirroring the PyTorch forward."""
    d = q.shape[-1]
    qk = jnp.einsum("bhqd,bhkd->bhqk", q, k) / math.sqrt(d)
    attn = jax.nn.softmax(qk, axis=-1)
    return jnp.einsum("bhqk,bhkd->bhqd", attn, v)


if __name__ == "__main__":
    B, H, S, D = 2, 4, 8, 32
    key = jax.random.PRNGKey(0)
    kq, kk, kv = jax.random.split(key, 3)
    q = jax.random.normal(kq, (B, H, S, D), dtype=jnp.float32)
    k = jax.random.normal(kk, (B, H, S, D), dtype=jnp.float32)
    v = jax.random.normal(kv, (B, H, S, D), dtype=jnp.float32)

    out = attention(q, k, v)
    jax.block_until_ready(out)

    ref = attention_ref(q, k, v)
    assert out.shape == (B, H, S, D)
    # Exact softmax divide: tolerance back to f32-roundoff levels.
    assert jnp.allclose(out, ref, atol=1e-4, rtol=1e-4), float(
        jnp.max(jnp.abs(out - ref))
    )
    print("KERNEL_OK")
</pallas_src>

<mosaic_0001>
module attributes {stable_mosaic.version = 11 : i64} {
  func.func @_attention_kernel(%arg0: memref<2x4x8x32xf32, #tpu.memory_space<vmem>>, %arg1: memref<2x4x8x32xf32, #tpu.memory_space<vmem>>, %arg2: memref<2x4x8x32xf32, #tpu.memory_space<vmem>>, %arg3: memref<2x4x8x32xf32, #tpu.memory_space<vmem>>) attributes {dimension_semantics = [], scalar_prefetch = 0 : i64, scratch_operands = 0 : i64, tpu.core_type = #tpu.core_type<tc>} {
    %c0 = arith.constant 0 : index
    %c0_0 = arith.constant 0 : index
    %c0_1 = arith.constant 0 : index
    %c0_2 = arith.constant 0 : index
    %0 = vector.load %arg0[%c0, %c0_0, %c0_1, %c0_2] : memref<2x4x8x32xf32, #tpu.memory_space<vmem>>, vector<2x4x8x32xf32>
    %1 = vector.shape_cast %0 : vector<2x4x8x32xf32> to vector<8x8x32xf32>
    %c0_3 = arith.constant 0 : index
    %c0_4 = arith.constant 0 : index
    %c0_5 = arith.constant 0 : index
    %c0_6 = arith.constant 0 : index
    %2 = vector.load %arg1[%c0_3, %c0_4, %c0_5, %c0_6] : memref<2x4x8x32xf32, #tpu.memory_space<vmem>>, vector<2x4x8x32xf32>
    %3 = vector.shape_cast %2 : vector<2x4x8x32xf32> to vector<8x8x32xf32>
    %c0_7 = arith.constant 0 : index
    %c0_8 = arith.constant 0 : index
    %c0_9 = arith.constant 0 : index
    %c0_10 = arith.constant 0 : index
    %4 = vector.load %arg2[%c0_7, %c0_8, %c0_9, %c0_10] : memref<2x4x8x32xf32, #tpu.memory_space<vmem>>, vector<2x4x8x32xf32>
    %5 = vector.shape_cast %4 : vector<2x4x8x32xf32> to vector<8x8x32xf32>
    "tpu.trace_start"() <{level = 10 : i32, message = "bqd,bkd->bqk"}> : () -> ()
    %cst = arith.constant dense<0.000000e+00> : vector<8x8x8xf32>
    %6 = tpu.matmul %1, %3, %cst {dimension_numbers = #tpu.dot_dimension_numbers<[2], [2], [1], [1], [0, 0, 0, 1, 1, 1], [0], [0]>} : vector<8x8x32xf32>, vector<8x8x32xf32>, vector<8x8x8xf32> -> vector<8x8x8xf32>
    "tpu.trace_stop"() : () -> ()
    %cst_11 = arith.constant 0.176776692 : f32
    %7 = vector.broadcast %cst_11 : f32 to vector<8x8x8xf32>
    %8 = arith.mulf %6, %7 : vector<8x8x8xf32>
    %cst_12 = arith.constant dense<0xFF800000> : vector<8x8xf32>
    %9 = vector.multi_reduction <maximumf>, %8, %cst_12 [2] : vector<8x8x8xf32> to vector<8x8xf32>
    %10 = vector.shape_cast %9 : vector<8x8xf32> to vector<8x8x1xf32>
    %11 = vector.broadcast %10 : vector<8x8x1xf32> to vector<8x8x8xf32>
    %12 = arith.subf %8, %11 : vector<8x8x8xf32>
    %13 = math.exp %12 : vector<8x8x8xf32>
    %cst_13 = arith.constant dense<0.000000e+00> : vector<8x8xf32>
    %14 = vector.multi_reduction <add>, %13, %cst_13 [2] : vector<8x8x8xf32> to vector<8x8xf32>
    %15 = vector.shape_cast %14 : vector<8x8xf32> to vector<8x8x1xf32>
    %16 = vector.broadcast %15 : vector<8x8x1xf32> to vector<8x8x8xf32>
    %17 = arith.divf %13, %16 : vector<8x8x8xf32>
    "tpu.trace_start"() <{level = 10 : i32, message = "bqk,bkd->bqd"}> : () -> ()
    %cst_14 = arith.constant dense<0.000000e+00> : vector<8x8x32xf32>
    %18 = tpu.matmul %17, %5, %cst_14 {dimension_numbers = #tpu.dot_dimension_numbers<[2], [1], [1], [2], [0, 0, 0, 1, 1, 2], [0], [0]>} : vector<8x8x8xf32>, vector<8x8x32xf32>, vector<8x8x32xf32> -> vector<8x8x32xf32>
    "tpu.trace_stop"() : () -> ()
    %19 = vector.shape_cast %18 : vector<8x8x32xf32> to vector<2x4x8x32xf32>
    %c0_15 = arith.constant 0 : index
    %c0_16 = arith.constant 0 : index
    %c0_17 = arith.constant 0 : index
    %c0_18 = arith.constant 0 : index
    %20 = vector.load %arg3[%c0_15, %c0_16, %c0_17, %c0_18] : memref<2x4x8x32xf32, #tpu.memory_space<vmem>>, vector<2x4x8x32xf32>
    tpu.vector_store %arg3[%c0_15, %c0_16, %c0_17, %c0_18], %19 {strides = array<i32>} : memref<2x4x8x32xf32, #tpu.memory_space<vmem>>, vector<2x4x8x32xf32>,
    return
  }
}

</mosaic_0001>

<bundles_post_ra>
// kernel: tpu_custom_call.1
= control target key start
LH: loop header
LB: loop body
LE: loop exit
PB: predicated region body
PF: predicated region fallthrough
CT: control target
= control target key end

     0   :  { %8 = vsyncpa [#allocation3], 0  ;;  %s1869_s0 = inlined_call_operand.hbm [shape: f32[2,4,8,32], index: 0, kind: input, shape index: {}]   ;;  %s1870_s1 = inlined_call_operand.hbm [shape: f32[2,4,8,32], index: 1, kind: input, shape index: {}]   ;;  %s1871_s2 = inlined_call_operand.hbm [shape: f32[2,4,8,32], index: 2, kind: input, shape index: {}]   ;;  %s1872_s3 = inlined_call_operand.hbm [shape: f32[2,4,8,32], index: 3, kind: output, shape index: {}]  }
   0x1   :  { %9 = vsyncpa [#allocation6], 0 }
   0x2   :  { %10 = vsyncpa [#allocation4], 0  ;;  %s1666_s12 = smov [#allocation5]   ;;  %s1667_s14 = smov [#allocation2]  }
   0x3   :  { %s28_s13 = sshll.u32 %s1666_s12, 4  ;;  %s16_s15 = sshll.u32 %s1667_s14, 4  ;;  %s29_s13 = int_to_ptr.vmem [resolvable:$true] %s28_s13  ;;  %s1694_s15 = int_to_ptr.vmem [resolvable:$true] %s16_s15 }
   0x4   :  { %s1572_s18 = scalar_lea.hbm %s1870_s1, 1024 }
   0x5   :  { %p1573_p0 = scmp.ne.s32.totalorder %s1870_s1, %s1572_s18  ;;  %p1576_p1 = scmp.lt.u32.totalorder %s1572_s18, %s1870_s1 }
   0x7   :  { %p1578_p2 = pnand %p1576_p1, %p1573_p0 }
   0x9   :  { %1581 = shalt.err (!%p1578_p2)
}
   0xa   :  { %s1582_s23 = scalar_lea.vmem %s29_s13, 1024  ;;  %p1587_p4 = scmp.lt.s32.totalorder %s29_s13, %s29_s13 }
   0xb   :  { %p1583_p3 = scmp.ne.s32.totalorder %s29_s13, %s1582_s23  ;;  %p1588_p5 = scmp.lt.s32.totalorder %s1582_s23, %s1582_s23 }
   0xd   :  { %p1589_p6 = por %p1588_p5, %p1587_p4 }
   0xf   :  { %p1590_p7 = pnand %p1589_p6, %p1583_p3 }
  0x11   :  { %1593 = shalt.err (!%p1590_p7)
}
  0x12   :  { %s1668_s24 = smov 128   ;;  %s1669_s25 = smov 8  }
  0x13   :  { %34 = dma.hbm_to_vmem [thread:$0]  %s1870_s1, 1024, %s29_s13, [#allocation6], %s1668_s24, %s1668_s24, %s1669_s25  }
  0x14   :  { %s1594_s30 = scalar_lea.hbm %s1869_s0, 1024 }
  0x15   :  { %p1595_p8 = scmp.ne.s32.totalorder %s1869_s0, %s1594_s30  ;;  %p1598_p9 = scmp.lt.u32.totalorder %s1594_s30, %s1869_s0 }
  0x17   :  { %p1600_p10 = pnand %p1598_p9, %p1595_p8 }
  0x19   :  { %1603 = shalt.err (!%p1600_p10)
}
  0x1a   :  { %s1604_s8 = scalar_lea.vmem %s1694_s15, 1024  ;;  %p1609_p12 = scmp.lt.s32.totalorder %s1694_s15, %s1694_s15 }
  0x1b   :  { %p1605_p11 = scmp.ne.s32.totalorder %s1694_s15, %s1604_s8  ;;  %p1610_p13 = scmp.lt.s32.totalorder %s1604_s8, %s1604_s8 }
  0x1d   :  { %p1611_p0 = por %p1610_p13, %p1609_p12 }
  0x1f   :  { %p1612_p1 = pnand %p1611_p0, %p1605_p11 }
  0x21   :  { %1615 = shalt.err (!%p1612_p1)
}
  0x22   :  { %22 = dma.hbm_to_vmem [thread:$0]  %s1869_s0, 1024, %s1694_s15, [#allocation3], %s1668_s24, %s1668_s24, %s1669_s25  }
  0x23   :  { %s1670_s10 = smov [#allocation7]   ;;  %s1616_s14 = scalar_lea.hbm %s1871_s2, 1024 }
  0x24   :  { %s40_s11 = sshll.u32 %s1670_s10, 4  ;;  %p1617_p2 = scmp.ne.s32.totalorder %s1871_s2, %s1616_s14  ;;  %s41_s11 = int_to_ptr.vmem [resolvable:$true] %s40_s11 }
  0x25   :  { %p1620_p3 = scmp.lt.u32.totalorder %s1616_s14, %s1871_s2 }
  0x27   :  { %p1622_p4 = pnand %p1620_p3, %p1617_p2 }
  0x29   :  { %1625 = shalt.err (!%p1622_p4)
}
  0x2a   :  { %s1626_s20 = scalar_lea.vmem %s41_s11, 1024  ;;  %p1631_p6 = scmp.lt.s32.totalorder %s41_s11, %s41_s11 }
  0x2b   :  { %p1627_p5 = scmp.ne.s32.totalorder %s41_s11, %s1626_s20  ;;  %p1632_p7 = scmp.lt.s32.totalorder %s1626_s20, %s1626_s20 }
  0x2d   :  { %p1633_p8 = por %p1632_p7, %p1631_p6 }
  0x2f   :  { %p1634_p9 = pnand %p1633_p8, %p1627_p5 }
  0x31   :  { %1637 = shalt.err (!%p1634_p9)
}
  0x32   :  { %46 = dma.hbm_to_vmem [thread:$0]  %s1871_s2, 1024, %s41_s11, [#allocation6], %s1668_s24, %s1668_s24, %s1669_s25  }
  0x33   :  { %1660 = dma.done.wait [#allocation3], 1024  }
  0x34   :  { %1661 = vsyncadd [#allocation3], 4294966272 }
  0x35   :  { %1662 = dma.done.wait [#allocation6], 2048  }
  0x36   :  { %1663 = vsyncadd [#allocation6], 4294965248  ;;  %v1671_v0 = vmov 0.0   ;;  %vm1672_vm0 = vmmov 0   ;;  %vm80_vm1 = vcmask 261120   ;;  %v64_v1 = vld [vmem:[#allocation5] sm:$0xff] }
  0x37   :  { %1452 = vmatprep.subr.mxu0 %v1671_v0  ;;  %1454 = vmatprep.mubr.msk.f32.mxu0 %vm1672_vm0, %v1671_v0  ;;  %v65_v2 = vld [vmem:[#allocation5 + $0x8] sm:$0xff]  ;;  %v56_v3 = vld [vmem:[#allocation2] sm:$0xff]  ;;  %v66_v5 = vld [vmem:[#allocation5 + $0x10] sm:$0xff]  ;;  %vm697_vm2 = vcmask 64512   ;;  %s1673_s2 = smov [#allocation8]  }
  0x38   :  { %1457 = vmatprep.subr.mxu1 %v1671_v0  ;;  %1459 = vmatprep.mubr.msk.f32.mxu1 %vm1672_vm0, %v1671_v0  ;;  %v57_v4 = vld [vmem:[#allocation2 + $0x8] sm:$0xff]  ;;  %v67_v6 = vld [vmem:[#allocation5 + $0x18] sm:$0xff]  ;;  %v58_v7 = vld [vmem:[#allocation2 + $0x10] sm:$0xff]  ;;  %s1383_s21 = sshll.u32 %s1673_s2, 4  ;;  %s1384_s21 = int_to_ptr.vmem [resolvable:$true] %s1383_s21 }
  0x39   :  { %1453 = vmatpush3.xpose.msk.msra.mxu0 %vm80_vm1, %v64_v1  ;;  %1458 = vmatpush3.xpose.msk.msra.mxu1 %vm80_vm1, %v65_v2  ;;  %v68_v8 = vld [vmem:[#allocation5 + $0x20] sm:$0xff]  ;;  %v59_v9 = vld [vmem:[#allocation2 + $0x18] sm:$0xff]  ;;  %v69_v10 = vld [vmem:[#allocation5 + $0x28] sm:$0xff]  ;;  %s1638_s22 = scalar_lea.vmem %s1384_s21, 1024  ;;  %p1643_p11 = scmp.lt.s32.totalorder %s1384_s21, %s1384_s21 }
  0x3a   :  { %1462 = vmatprep.subr.mxu0 %v1671_v0  ;;  %1467 = vmatprep.subr.mxu1 %v1671_v0  ;;  %v60_v11 = vld [vmem:[#allocation2 + $0x20] sm:$0xff]  ;;  %v70_v12 = vld [vmem:[#allocation5 + $0x30] sm:$0xff]  ;;  %v61_v13 = vld [vmem:[#allocation2 + $0x28] sm:$0xff]  ;;  %p1639_p10 = scmp.ne.s32.totalorder %s1384_s21, %s1638_s22  ;;  %p1644_p12 = scmp.lt.s32.totalorder %s1638_s22, %s1638_s22 }
  0x3b   :  { %v71_v14 = vld [vmem:[#allocation5 + $0x38] sm:$0xff]  ;;  %v62_v15 = vld [vmem:[#allocation2 + $0x30] sm:$0xff] }
  0x3c   :  { %1455 = vmatmul.mubr.msk.f32.vlgmr.msra.gmra.mrb[0].mxu0 %vm80_vm1, %v56_v3  ;;  %1460 = vmatmul.mubr.msk.f32.vlgmr.msra.gmra.mrb[0].mxu1 %vm80_vm1, %v57_v4  ;;  %v63_v16 = vld [vmem:[#allocation2 + $0x38] sm:$0xff]  ;;  %p1645_p13 = por %p1644_p12, %p1643_p11 }
  0x3d   :  { %1463 = vmatpush3.xpose.msk.msra.mxu0 %vm80_vm1, %v66_v5  ;;  %1464 = vmatprep.mubr.msk.f32.mxu0 %vm1672_vm0, %v1671_v0 }
  0x3e   :  { %1472 = vmatprep.subr.mxu0 %v1671_v0  ;;  %1468 = vmatpush3.xpose.msk.msra.mxu1 %vm80_vm1, %v67_v6  ;;  %p1646_p0 = pnand %p1645_p13, %p1639_p10 }
  0x3f   :  { %1469 = vmatprep.mubr.msk.f32.mxu1 %vm1672_vm0, %v1671_v0  ;;  %1477 = vmatprep.subr.mxu1 %v1671_v0 }
  0x40   :  { %1465 = vmatmul.mubr.msk.f32.vlgmr.msra.gmra.mrb[2].mxu0 %vm80_vm1, %v58_v7 }
  0x41   :  { %1473 = vmatpush3.xpose.msk.msra.mxu0 %vm80_vm1, %v68_v8  ;;  %1474 = vmatprep.mubr.msk.f32.mxu0 %vm1672_vm0, %v1671_v0 }
  0x42   :  { %1470 = vmatmul.mubr.msk.f32.vlgmr.msra.gmra.mrb[2].mxu1 %vm80_vm1, %v59_v9  ;;  %1482 = vmatprep.subr.mxu0 %v1671_v0 }
  0x43   :  { %1478 = vmatpush3.xpose.msk.msra.mxu1 %vm80_vm1, %v69_v10  ;;  %1479 = vmatprep.mubr.msk.f32.mxu1 %vm1672_vm0, %v1671_v0 }
  0x44   :  { %1475 = vmatmul.mubr.msk.f32.vlgmr.msra.gmra.mrb[4].mxu0 %vm80_vm1, %v60_v11  ;;  %1487 = vmatprep.subr.mxu1 %v1671_v0 }
  0x45   :  { %1483 = vmatpush3.xpose.msk.msra.mxu0 %vm80_vm1, %v70_v12  ;;  %1484 = vmatprep.mubr.msk.f32.mxu0 %vm1672_vm0, %v1671_v0 }
  0x46   :  { %1480 = vmatmul.mubr.msk.f32.vlgmr.msra.gmra.mrb[4].mxu1 %vm80_vm1, %v61_v13  ;;  %1492 = vmatprep.subr.mxu0 %v1671_v0 }
  0x47   :  { %1488 = vmatpush3.xpose.msk.msra.mxu1 %vm80_vm1, %v71_v14  ;;  %1489 = vmatprep.mubr.msk.f32.mxu1 %vm1672_vm0, %v1671_v0 }
  0x48   :  { %1485 = vmatmul.mubr.msk.f32.vlgmr.msra.gmra.mrb[6].mxu0 %vm80_vm1, %v62_v15  ;;  %1497 = vmatprep.subr.mxu1 %v1671_v0 }
  0x49   :  { %1494 = vmatprep.mubr.msk.f32.mxu0 %vm1672_vm0, %v1671_v0 }
  0x4a   :  { %1490 = vmatmul.mubr.msk.f32.vlgmr.msra.gmra.mrb[6].mxu1 %vm80_vm1, %v63_v16 }
  0x4b   :  { %1499 = vmatprep.mubr.msk.f32.mxu1 %vm1672_vm0, %v1671_v0 }
 0x10f   :  { %v153_v17 = vpop.f32.mrb[0].mxu0  ;;  %v229_v18 = vpop.f32.mrb[0].mxu1 }
 0x110   :  { %v689_v19 = vmul.f32 0.17677669, %v153_v17  ;;  %v1456_v20 = vpop.f32.mrb[1].mxu0  ;;  %v690_v21 = vmul.f32 0.17677669, %v229_v18  ;;  %v1461_v22 = vpop.f32.mrb[1].mxu1 }
 0x112   :  { %v698_v23 = vsel %vm697_vm2, %v689_v19, -inf  ;;  %v701_v27 = vsel %vm697_vm2, %v690_v21, -inf }
 0x113   :  { %699 = vmax.xlane.f32.xlu0 %v698_v23  ;;  %v305_v24 = vpop.f32.mrb[2].mxu0 }
 0x114   :  { %v691_v25 = vmul.f32 0.17677669, %v305_v24  ;;  %v1466_v26 = vpop.f32.mrb[3].mxu0 }
 0x115   :  { %v381_v28 = vpop.f32.mrb[2].mxu1  ;;  %v72_v26 = vld [vmem:[#allocation7] sm:$0xff] }
 0x116   :  { %v692_v29 = vmul.f32 0.17677669, %v381_v28  ;;  %v704_v30 = vsel %vm697_vm2, %v691_v25, -inf  ;;  %v1471_v31 = vpop.f32.mrb[3].mxu1  ;;  %1493 = vmatpush3.msra.mxu0 %v72_v26 }
 0x117   :  { %702 = vmax.xlane.f32.xlu0 %v701_v27  ;;  %705 = vmax.xlane.f32.xlu1 %v704_v30  ;;  %v457_v32 = vpop.f32.mrb[4].mxu0  ;;  %v73_v27 = vld [vmem:[#allocation7 + $0x8] sm:$0xff] }
 0x118   :  { %v693_v33 = vmul.f32 0.17677669, %v457_v32  ;;  %v1476_v34 = vpop.f32.mrb[5].mxu0  ;;  %v707_v35 = vsel %vm697_vm2, %v692_v29, -inf  ;;  %1502 = vmatprep.subr.mxu0 %v1671_v0  ;;  %1498 = vmatpush3.msra.mxu1 %v73_v27 }
 0x119   :  { %v533_v36 = vpop.f32.mrb[4].mxu1  ;;  %1507 = vmatprep.subr.mxu1 %v1671_v0 }
 0x11a   :  { %v694_v37 = vmul.f32 0.17677669, %v533_v36  ;;  %v710_v38 = vsel %vm697_vm2, %v693_v33, -inf  ;;  %v1481_v39 = vpop.f32.mrb[5].mxu1  ;;  %v74_v36 = vld [vmem:[#allocation7 + $0x10] sm:$0xff] }
 0x11b   :  { %708 = vmax.xlane.f32.xlu1 %v707_v35  ;;  %711 = vmax.xlane.f32.xlu0 %v710_v38  ;;  %v609_v40 = vpop.f32.mrb[6].mxu0 }
 0x11c   :  { %v695_v41 = vmul.f32 0.17677669, %v609_v40  ;;  %v713_v42 = vsel %vm697_vm2, %v694_v37, -inf  ;;  %v1486_v43 = vpop.f32.mrb[7].mxu0 }
 0x11d   :  { %v685_v44 = vpop.f32.mrb[6].mxu1 }
 0x11e   :  { %v696_v45 = vmul.f32 0.17677669, %v685_v44  ;;  %v716_v46 = vsel %vm697_vm2, %v695_v41, -inf  ;;  %v1491_v47 = vpop.f32.mrb[7].mxu1  ;;  %v76_v44 = vld [vmem:[#allocation7 + $0x20] sm:$0xff] }
 0x11f   :  { %714 = vmax.xlane.f32.xlu1 %v713_v42  ;;  %717 = vmax.xlane.f32.xlu0 %v716_v46  ;;  %v75_v42 = vld [vmem:[#allocation7 + $0x18] sm:$0xff] }
 0x120   :  { %v719_v48 = vsel %vm697_vm2, %v696_v45, -inf }
 0x123   :  { %720 = vmax.xlane.f32.xlu1 %v719_v48  ;;  %v77_v48 = vld [vmem:[#allocation7 + $0x28] sm:$0xff] }
 0x1a0   :  { %v700_v49 = vpop.xlane.xlu0 %699 }
 0x1a1   :  { %v722_v50 = vsub.f32 %v689_v19, %v700_v49 }
 0x1a3   :  { %v730_v51 = vmul.f32 1.442695, %v722_v50  ;;  %v78_v50 = vld [vmem:[#allocation7 + $0x30] sm:$0xff] }
 0x1a4   :  { %v703_v52 = vpop.xlane.xlu0 %702  ;;  %v706_v53 = vpop.xlane.xlu1 %705 }
 0x1a5   :  { %1540 = vpow2.f32 %v730_v51  ;;  %v723_v54 = vsub.f32 %v690_v21, %v703_v52  ;;  %v724_v55 = vsub.f32 %v691_v25, %v706_v53 }
 0x1a7   :  { %v732_v56 = vmul.f32 1.442695, %v723_v54  ;;  %v734_v57 = vmul.f32 1.442695, %v724_v55  ;;  %v79_v54 = vld [vmem:[#allocation7 + $0x38] sm:$0xff] }
 0x1a8   :  { %v709_v58 = vpop.xlane.xlu1 %708  ;;  %v712_v59 = vpop.xlane.xlu0 %711 }
 0x1a9   :  { %1542 = vpow2.f32 %v732_v56  ;;  %v725_v60 = vsub.f32 %v692_v29, %v709_v58  ;;  %v726_v61 = vsub.f32 %v693_v33, %v712_v59 }
 0x1aa   :  { %1544 = vpow2.f32 %v734_v57 }
 0x1ab   :  { %v736_v62 = vmul.f32 1.442695, %v725_v60  ;;  %v738_v63 = vmul.f32 1.442695, %v726_v61 }
 0x1ac   :  { %v715_v1 = vpop.xlane.xlu1 %714  ;;  %v718_v2 = vpop.xlane.xlu0 %717 }
 0x1ad   :  { %1546 = vpow2.f32 %v736_v62  ;;  %v727_v3 = vsub.f32 %v694_v37, %v715_v1  ;;  %v728_v4 = vsub.f32 %v695_v41, %v718_v2 }
 0x1ae   :  { %1548 = vpow2.f32 %v738_v63 }
 0x1af   :  { %v1541_v5 = vpop.eup %1540  ;;  %v740_v6 = vmul.f32 1.442695, %v727_v3  ;;  %v742_v7 = vmul.f32 1.442695, %v728_v4 }
 0x1b0   :  { %v721_v8 = vpop.xlane.xlu1 %720  ;;  %v746_v9 = vsel %vm697_vm2, %v1541_v5, 0.0 }
 0x1b1   :  { %1550 = vpow2.f32 %v740_v6  ;;  %v729_v10 = vsub.f32 %v696_v45, %v721_v8  ;;  %747 = vadd.xlane.f32.xlu0 %v746_v9 }
 0x1b2   :  { %1552 = vpow2.f32 %v742_v7 }
 0x1b3   :  { %v1543_v11 = vpop.eup %1542  ;;  %v744_v12 = vmul.f32 1.442695, %v729_v10 }
 0x1b4   :  { %v1545_v13 = vpop.eup %1544  ;;  %v749_v14 = vsel %vm697_vm2, %v1543_v11, 0.0 }
 0x1b5   :  { %1554 = vpow2.f32 %v744_v12  ;;  %750 = vadd.xlane.f32.xlu1 %v749_v14  ;;  %v752_v15 = vsel %vm697_vm2, %v1545_v13, 0.0 }
 0x1b6   :  { %753 = vadd.xlane.f32.xlu0 %v752_v15 }
 0x1b7   :  { %v1547_v16 = vpop.eup %1546 }
 0x1b8   :  { %v1549_v17 = vpop.eup %1548  ;;  %v755_v18 = vsel %vm697_vm2, %v1547_v16, 0.0 }
 0x1b9   :  { %756 = vadd.xlane.f32.xlu1 %v755_v18  ;;  %v758_v19 = vsel %vm697_vm2, %v1549_v17, 0.0 }
 0x1ba   :  { %759 = vadd.xlane.f32.xlu0 %v758_v19 }
 0x1bb   :  { %v1805_v20 = vpop.eup %1550 }
 0x1bc   :  { %v1807_v21 = vpop.eup %1552  ;;  %v761_v22 = vsel %vm697_vm2, %v1805_v20, 0.0 }
 0x1bd   :  { %762 = vadd.xlane.f32.xlu1 %v761_v22  ;;  %v764_v23 = vsel %vm697_vm2, %v1807_v21, 0.0 }
 0x1be   :  { %765 = vadd.xlane.f32.xlu0 %v764_v23 }
 0x1bf   :  { %v1813_v24 = vpop.eup %1554 }
 0x1c0   :  { %v767_v25 = vsel %vm697_vm2, %v1813_v24, 0.0 }
 0x1c1   :  { %768 = vadd.xlane.f32.xlu1 %v767_v25 }
 0x23e   :  { %v748_v28 = vpop.xlane.xlu0 %747 }
 0x23f   :  { %1556 = vrcp.f32 %v748_v28 }
 0x242   :  { %v751_v29 = vpop.xlane.xlu1 %750 }
 0x243   :  { %1558 = vrcp.f32 %v751_v29  ;;  %v754_v30 = vpop.xlane.xlu0 %753 }
 0x244   :  { %1560 = vrcp.f32 %v754_v30 }
 0x246   :  { %v757_v31 = vpop.xlane.xlu1 %756 }
 0x247   :  { %1562 = vrcp.f32 %v757_v31  ;;  %v760_v32 = vpop.xlane.xlu0 %759 }
 0x248   :  { %1564 = vrcp.f32 %v760_v32 }
 0x249   :  { %v1557_v33 = vpop.eup %1556 }
 0x24a   :  { %v771_v34 = vmul.f32 %v1557_v33, %v1541_v5  ;;  %v763_v35 = vpop.xlane.xlu1 %762 }
 0x24b   :  { %1566 = vrcp.f32 %v763_v35  ;;  %v766_v37 = vpop.xlane.xlu0 %765 }
 0x24c   :  { %1568 = vrcp.f32 %v766_v37  ;;  %1495 = vmatmul.mubr.msk.f32.vlgmr.msra.gmra.mrb[8].mxu0 %vm697_vm2, %v771_v34 }
 0x24d   :  { %v1559_v38 = vpop.eup %1558  ;;  %1503 = vmatpush3.msra.mxu0 %v74_v36  ;;  %1504 = vmatprep.mubr.msk.f32.mxu0 %vm1672_vm0, %v1671_v0 }
 0x24e   :  { %v1561_v39 = vpop.eup %1560  ;;  %v773_v40 = vmul.f32 %v1559_v38, %v1543_v11  ;;  %v769_v41 = vpop.xlane.xlu1 %768  ;;  %1512 = vmatprep.subr.mxu0 %v1671_v0 }
 0x24f   :  { %v775_v43 = vmul.f32 %v1561_v39, %v1545_v13  ;;  %1570 = vrcp.f32 %v769_v41 }
 0x250   :  { %1500 = vmatmul.mubr.msk.f32.vlgmr.msra.gmra.mrb[8].mxu1 %vm697_vm2, %v773_v40 }
 0x251   :  { %v1563_v45 = vpop.eup %1562  ;;  %1505 = vmatmul.mubr.msk.f32.vlgmr.msra.gmra.mrb[10].mxu0 %vm697_vm2, %v775_v43  ;;  %1508 = vmatpush3.msra.mxu1 %v75_v42 }
 0x252   :  { %v1565_v46 = vpop.eup %1564  ;;  %v777_v47 = vmul.f32 %v1563_v45, %v1547_v16  ;;  %1509 = vmatprep.mubr.msk.f32.mxu1 %vm1672_vm0, %v1671_v0  ;;  %1513 = vmatpush3.msra.mxu0 %v76_v44 }
 0x253   :  { %v779_v49 = vmul.f32 %v1565_v46, %v1549_v17  ;;  %1514 = vmatprep.mubr.msk.f32.mxu0 %vm1672_vm0, %v1671_v0  ;;  %1517 = vmatprep.subr.mxu1 %v1671_v0 }
 0x254   :  { %1510 = vmatmul.mubr.msk.f32.vlgmr.msra.gmra.mrb[10].mxu1 %vm697_vm2, %v777_v47  ;;  %1522 = vmatprep.subr.mxu0 %v1671_v0 }
 0x255   :  { %v1567_v51 = vpop.eup %1566  ;;  %1515 = vmatmul.mubr.msk.f32.vlgmr.msra.gmra.mrb[12].mxu0 %vm697_vm2, %v779_v49  ;;  %1518 = vmatpush3.msra.mxu1 %v77_v48 }
 0x256   :  { %v1569_v52 = vpop.eup %1568  ;;  %v781_v53 = vmul.f32 %v1567_v51, %v1805_v20  ;;  %1519 = vmatprep.mubr.msk.f32.mxu1 %vm1672_vm0, %v1671_v0  ;;  %1523 = vmatpush3.msra.mxu0 %v78_v50 }
 0x257   :  { %v783_v55 = vmul.f32 %v1569_v52, %v1807_v21  ;;  %1524 = vmatprep.mubr.msk.f32.mxu0 %vm1672_vm0, %v1671_v0  ;;  %1527 = vmatprep.subr.mxu1 %v1671_v0 }
 0x258   :  { %1520 = vmatmul.mubr.msk.f32.vlgmr.msra.gmra.mrb[12].mxu1 %vm697_vm2, %v781_v53 }
 0x259   :  { %v1571_v56 = vpop.eup %1570  ;;  %1525 = vmatmul.mubr.msk.f32.vlgmr.msra.gmra.mrb[14].mxu0 %vm697_vm2, %v783_v55  ;;  %1528 = vmatpush3.msra.mxu1 %v79_v54 }
 0x25a   :  { %v785_v57 = vmul.f32 %v1571_v56, %v1813_v24  ;;  %1529 = vmatprep.mubr.msk.f32.mxu1 %vm1672_vm0, %v1671_v0 }
 0x25c   :  { %1530 = vmatmul.mubr.msk.f32.vlgmr.msra.gmra.mrb[14].mxu1 %vm697_vm2, %v785_v57 }
 0x31f   :  { %v855_v58 = vpop.f32.mrb[8].mxu0 }
 0x320   :  { %1370 = vst.msk [vmem:[#allocation8] sm:$0xff] %vm80_vm1, %v855_v58  ;;  %v1496_v59 = vpop.f32.mrb[9].mxu0 }
 0x323   :  { %v928_v60 = vpop.f32.mrb[8].mxu1 }
 0x324   :  { %1371 = vst.msk [vmem:[#allocation8 + $0x8] sm:$0xff] %vm80_vm1, %v928_v60  ;;  %v1001_v61 = vpop.f32.mrb[10].mxu0  ;;  %v1501_v62 = vpop.f32.mrb[9].mxu1 }
 0x325   :  { %1372 = vst.msk [vmem:[#allocation8 + $0x10] sm:$0xff] %vm80_vm1, %v1001_v61  ;;  %v1506_v63 = vpop.f32.mrb[11].mxu0 }
 0x327   :  { %v1074_v1 = vpop.f32.mrb[10].mxu1 }
 0x328   :  { %1373 = vst.msk [vmem:[#allocation8 + $0x18] sm:$0xff] %vm80_vm1, %v1074_v1  ;;  %v1147_v2 = vpop.f32.mrb[12].mxu0  ;;  %v1511_v3 = vpop.f32.mrb[11].mxu1 }
 0x329   :  { %1374 = vst.msk [vmem:[#allocation8 + $0x20] sm:$0xff] %vm80_vm1, %v1147_v2  ;;  %v1516_v0 = vpop.f32.mrb[13].mxu0 }
 0x32b   :  { %v1220_v4 = vpop.f32.mrb[12].mxu1 }
 0x32c   :  { %1375 = vst.msk [vmem:[#allocation8 + $0x28] sm:$0xff] %vm80_vm1, %v1220_v4  ;;  %v1293_v5 = vpop.f32.mrb[14].mxu0  ;;  %v1521_v6 = vpop.f32.mrb[13].mxu1 }
 0x32d   :  { %1376 = vst.msk [vmem:[#allocation8 + $0x30] sm:$0xff] %vm80_vm1, %v1293_v5  ;;  %v1526_v7 = vpop.f32.mrb[15].mxu0 }
 0x32f   :  { %v1366_v8 = vpop.f32.mrb[14].mxu1 }
 0x330   :  { %1377 = vst.msk [vmem:[#allocation8 + $0x38] sm:$0xff] %vm80_vm1, %v1366_v8  ;;  %v1531_v9 = vpop.f32.mrb[15].mxu1 }
 0x331   :  { %1649 = shalt.err (!%p1646_p0)
}
 0x332   :  { %s1650_s27 = scalar_lea.hbm %s1872_s3, 1024 }
 0x333   :  { %p1651_p1 = scmp.ne.s32.totalorder %s1872_s3, %s1650_s27  ;;  %p1654_p2 = scmp.lt.u32.totalorder %s1650_s27, %s1872_s3 }
 0x335   :  { %p1656_p3 = pnand %p1654_p2, %p1651_p1 }
 0x337   :  { %1659 = shalt.err (!%p1656_p3)
}
 0x338   :  { %1389 = dma.vmem_to_hbm [thread:$0]  %s1384_s21, 1024, %s1872_s3, [#allocation4], %s1668_s24, %s1668_s24, %s1669_s25  }
 0x339   :  { %1664 = dma.done.wait [#allocation4], 1024  }
 0x33a   :  { %1665 = vsyncadd [#allocation4], 4294966272 }
 0x33b   :  { %1393 = vsyncpa [#allocation3], 1 }
 0x33c   :  { %1394 = vsyncpa [#allocation6], 1 }
 0x33d   :  { %1395 = vsyncpa [#allocation4], 1 }

</bundles_post_ra>
